<compile_context>
chip_gen: v6e
topology: v6e:2x2x1
jax: 0.10.0
libtpu: 0.0.40
codegen_flags: <defaults>
</compile_context>

<pallas_src>
import jax
import jax.numpy as jnp
from jax.experimental import pallas as pl
from jax.experimental.pallas import tpu as pltpu


# Full-range BT.601 RGB -> YCbCr (255 range), matching output_cspace='YCbCr',
# output_range=255 declared in __init__.  Baked in as compile-time constants.
_CM = (
    (0.299,      0.587,      0.114,      0.0),
    (-0.168736, -0.331264,   0.5,      128.0),
    (0.5,       -0.418688,  -0.081312, 128.0),
)

_MIB = 1024 * 1024


def _codec_kernel(x_ref, o_ref):
    """One (1, 3, TH, Wp) row-tile per grid step.

    x_ref : (1, 3, TH, Wp) input block in VMEM (RGB, 0..255; any real dtype)
    o_ref : (1, 3, TH, Wp) output block (YCbCr, float32, 0..255)
    """
    r = x_ref[0, 0, :, :].astype(jnp.float32)
    g = x_ref[0, 1, :, :].astype(jnp.float32)
    b = x_ref[0, 2, :, :].astype(jnp.float32)
    for c in range(3):                       # unrolled, 3 output channels (VPU)
        wr, wg, wb, off = _CM[c]
        v = wr * r + wg * g + wb * b + jnp.float32(off)
        # torch.nan_to_num(..., nan=0, posinf=0, neginf=0) == zero non-finite.
        v = jnp.where(jnp.isfinite(v), v, jnp.float32(0.0))
        o_ref[0, c, :, :] = v


def _vmem_budget_bytes():
    """Tile-sizing budget, derived from physical VMEM when queryable."""
    default = 20 * _MIB
    try:
        info = pltpu.get_tpu_info()
        cap = getattr(info, "vmem_capacity_bytes", None)
        if cap:
            # Use at most ~30% of physical VMEM for this kernel's buffers
            # (v7x has only 64 MiB per TC), never more than the 20 MiB default.
            return max(8 * _MIB, min(default, int(cap * 0.3)))
    except Exception:
        pass
    return default


def _bytes_per_tile_row(Wp, in_itemsize):
    """Live VMEM per row of tile height.

    2x double-buffered input + 2x double-buffered f32 output blocks, plus the
    in-kernel f32 temporaries (r/g/b cast slabs + per-channel result ~= 4
    full-tile f32 slabs) that the previous version under-counted.
    """
    return (2 * 3 * Wp * in_itemsize      # input double buffers
            + 2 * 3 * Wp * 4              # output double buffers (f32)
            + 4 * Wp * 4)                 # in-kernel f32 temporaries


def _choose_tile_h(H, Wp, in_itemsize, vmem_budget_bytes, min_row_tiles=2):
    """Pick TH (multiple of 8, or full H) for the row-tile pipeline.

    Caps TH so the (parallel) H grid axis has at least `min_row_tiles` steps,
    keeping both TensorCores busy on v7x (harmless on v5e/v6e).
    """
    bpr = _bytes_per_tile_row(Wp, in_itemsize)
    th = max(1, vmem_budget_bytes // bpr)
    th = min(th, -(-H // min_row_tiles))          # cdiv(H, min_row_tiles)
    if th >= H:
        return H                                  # full-H block is always legal
    th = max(8, (th // 8) * 8)                    # sublane multiple
    return min(th, H)


def codec_model_forward(image, return_bpp=False, tile_h=None):
    """Pallas equivalent of CodecModel(is_main=False).forward.

    image: (C, H, W) RGB tensor, values in [0, 255] (input_range = 255).
           Pass the narrowest dtype you have (uint8 / bf16 / f32); the upcast
           to float32 happens in-kernel, so narrow inputs read less HBM.
    Returns {'x_hat': (1, C, H, W) float32 YCbCr, 'likelihoods': None,
             'bpp': nan}.
    """
    # image.unsqueeze(0)  -- glue in plain JAX
    x4 = image[None, ...]
    N, C, H, W = x4.shape
    assert C == 3, "CodecModel expects 3-channel RGB input"
    assert N == 1

    # Lane-dense width: pad W up to a multiple of 128 so output stores are
    # unmasked vst; slice the padding back off after the call.
    Wp = ((W + 127) // 128) * 128
    if Wp != W:
        x4 = jnp.pad(x4, ((0, 0), (0, 0), (0, 0), (0, Wp - W)))

    in_itemsize = jnp.dtype(x4.dtype).itemsize
    if tile_h is not None:
        TH = min(tile_h, H)
    else:
        TH = _choose_tile_h(H, Wp, in_itemsize, _vmem_budget_bytes())
    grid = (pl.cdiv(H, TH),)                      # N==1: batch axis dropped

    # 3 ch x (3 mul + 3 add) per pixel; narrow reads + f32 writes.
    cost = pl.CostEstimate(
        flops=18 * H * W,
        transcendentals=0,
        bytes_accessed=(3 * in_itemsize + 3 * 4) * H * W,
    )

    out = pl.pallas_call(
        _codec_kernel,
        out_shape=jax.ShapeDtypeStruct((N, C, H, Wp), jnp.float32),
        grid=grid,
        in_specs=[pl.BlockSpec((1, C, TH, Wp), lambda h: (0, 0, h, 0))],
        out_specs=pl.BlockSpec((1, C, TH, Wp), lambda h: (0, 0, h, 0)),
        compiler_params=pltpu.CompilerParams(
            dimension_semantics=("parallel",),
            vmem_limit_bytes=28 * _MIB,           # safe on v5e/v6e/v7x
        ),
        cost_estimate=cost,
    )(x4)

    if Wp != W:
        out = out[:, :, :, :W]

    # bpp comes from the external entropy coder; module's fallback is NaN.
    bpp = jnp.array(jnp.nan, dtype=jnp.float32)
    return {"x_hat": out, "likelihoods": None, "bpp": bpp}


def _reference_forward(image):
    """Pure-JAX reference for correctness check."""
    x = image[None, ...].astype(jnp.float32)
    r, g, b = x[:, 0], x[:, 1], x[:, 2]
    chans = []
    for c in range(3):
        wr, wg, wb, off = _CM[c]
        v = wr * r + wg * g + wb * b + off
        v = jnp.nan_to_num(v, nan=0.0, posinf=0.0, neginf=0.0)
        chans.append(v)
    return jnp.stack(chans, axis=1)


if __name__ == "__main__":
    key = jax.random.PRNGKey(0)
    k1, k2 = jax.random.split(key)

    # 1) Lane-aligned width; NaN/Inf injected to exercise the nan_to_num path.
    C, H, W = 3, 16, 128
    image = jax.random.uniform(k1, (C, H, W), dtype=jnp.float32) * 255.0
    image = image.at[0, 0, 0].set(jnp.nan)
    image = image.at[1, 0, 1].set(jnp.inf)
    image = image.at[2, 0, 2].set(-jnp.inf)

    result = codec_model_forward(image)
    x_hat = jax.block_until_ready(result["x_hat"])
    ref = _reference_forward(image)
    assert x_hat.shape == (1, C, H, W)
    assert x_hat.dtype == jnp.float32
    assert bool(jnp.all(jnp.isfinite(x_hat)))
    assert bool(jnp.allclose(x_hat, ref, atol=1e-3, rtol=1e-5))
    assert bool(jnp.isnan(result["bpp"]))
    assert result["likelihoods"] is None

    # 2) Explicit small tile to force multiple pipelined grid steps.
    result_tiled = codec_model_forward(image, tile_h=8)
    x_hat_tiled = jax.block_until_ready(result_tiled["x_hat"])
    assert bool(jnp.allclose(x_hat_tiled, ref, atol=1e-3, rtol=1e-5))

    # 3) Non-multiple-of-128 width -> lane padding + slice-back path.
    C2, H2, W2 = 3, 24, 100
    image2 = jax.random.uniform(k2, (C2, H2, W2), dtype=jnp.float32) * 255.0
    result2 = codec_model_forward(image2)
    x_hat2 = jax.block_until_ready(result2["x_hat"])
    ref2 = _reference_forward(image2)
    assert x_hat2.shape == (1, C2, H2, W2)
    assert bool(jnp.allclose(x_hat2, ref2, atol=1e-3, rtol=1e-5))

    print("KERNEL_OK")
</pallas_src>

<mosaic_0001>
module attributes {stable_mosaic.version = 11 : i64} {
  func.func @_codec_kernel(%arg0: i32, %arg1: memref<1x3x8x128xf32, #tpu.memory_space<vmem>>, %arg2: memref<1x3x8x128xf32, #tpu.memory_space<vmem>>) attributes {dimension_semantics = [#tpu.dimension_semantics<parallel>], iteration_bounds = array<i64: 2>, scalar_prefetch = 0 : i64, scratch_operands = 0 : i64, tpu.core_type = #tpu.core_type<tc>, window_params = [{transform_indices = @transform_0, window_bounds = array<i64: 1, 3, 8, 128>}, {transform_indices = @transform_1, window_bounds = array<i64: 1, 3, 8, 128>}]} {
    %c0 = arith.constant 0 : index
    %c0_0 = arith.constant 0 : index
    %c0_1 = arith.constant 0 : index
    %c0_2 = arith.constant 0 : index
    %0 = vector.load %arg1[%c0, %c0_0, %c0_1, %c0_2] : memref<1x3x8x128xf32, #tpu.memory_space<vmem>>, vector<1x1x8x128xf32>
    %1 = vector.shape_cast %0 : vector<1x1x8x128xf32> to vector<8x128xf32>
    %c0_3 = arith.constant 0 : index
    %c1 = arith.constant 1 : index
    %c0_4 = arith.constant 0 : index
    %c0_5 = arith.constant 0 : index
    %2 = vector.load %arg1[%c0_3, %c1, %c0_4, %c0_5] : memref<1x3x8x128xf32, #tpu.memory_space<vmem>>, vector<1x1x8x128xf32>
    %3 = vector.shape_cast %2 : vector<1x1x8x128xf32> to vector<8x128xf32>
    %c0_6 = arith.constant 0 : index
    %c2 = arith.constant 2 : index
    %c0_7 = arith.constant 0 : index
    %c0_8 = arith.constant 0 : index
    %4 = vector.load %arg1[%c0_6, %c2, %c0_7, %c0_8] : memref<1x3x8x128xf32, #tpu.memory_space<vmem>>, vector<1x1x8x128xf32>
    %5 = vector.shape_cast %4 : vector<1x1x8x128xf32> to vector<8x128xf32>
    %cst = arith.constant 2.990000e-01 : f32
    %6 = vector.broadcast %cst : f32 to vector<8x128xf32>
    %7 = arith.mulf %6, %1 : vector<8x128xf32>
    %cst_9 = arith.constant 5.870000e-01 : f32
    %8 = vector.broadcast %cst_9 : f32 to vector<8x128xf32>
    %9 = arith.mulf %8, %3 : vector<8x128xf32>
    %10 = arith.addf %7, %9 : vector<8x128xf32>
    %cst_10 = arith.constant 1.140000e-01 : f32
    %11 = vector.broadcast %cst_10 : f32 to vector<8x128xf32>
    %12 = arith.mulf %11, %5 : vector<8x128xf32>
    %13 = arith.addf %10, %12 : vector<8x128xf32>
    %cst_11 = arith.constant 0.000000e+00 : f32
    %14 = vector.broadcast %cst_11 : f32 to vector<8x128xf32>
    %15 = arith.addf %13, %14 : vector<8x128xf32>
    %16 = tpu.weird %15 : vector<8x128xf32> -> vector<8x128xi1>
    %cst_12 = arith.constant dense<true> : vector<8x128xi1>
    %17 = arith.xori %16, %cst_12 : vector<8x128xi1>
    %cst_13 = arith.constant 0.000000e+00 : f32
    %18 = vector.broadcast %cst_13 : f32 to vector<8x128xf32>
    %19 = arith.select %17, %15, %18 : vector<8x128xi1>, vector<8x128xf32>
    %c0_14 = arith.constant 0 : index
    %c0_15 = arith.constant 0 : index
    %c0_16 = arith.constant 0 : index
    %c0_17 = arith.constant 0 : index
    %20 = vector.load %arg2[%c0_14, %c0_15, %c0_16, %c0_17] : memref<1x3x8x128xf32, #tpu.memory_space<vmem>>, vector<1x1x8x128xf32>
    %21 = vector.shape_cast %20 : vector<1x1x8x128xf32> to vector<8x128xf32>
    %22 = vector.shape_cast %19 : vector<8x128xf32> to vector<1x1x8x128xf32>
    tpu.vector_store %arg2[%c0_14, %c0_15, %c0_16, %c0_17], %22 {strides = array<i32>} : memref<1x3x8x128xf32, #tpu.memory_space<vmem>>, vector<1x1x8x128xf32>,
    %cst_18 = arith.constant -1.687360e-01 : f32
    %23 = vector.broadcast %cst_18 : f32 to vector<8x128xf32>
    %24 = arith.mulf %23, %1 : vector<8x128xf32>
    %cst_19 = arith.constant -3.312640e-01 : f32
    %25 = vector.broadcast %cst_19 : f32 to vector<8x128xf32>
    %26 = arith.mulf %25, %3 : vector<8x128xf32>
    %27 = arith.addf %24, %26 : vector<8x128xf32>
    %cst_20 = arith.constant 5.000000e-01 : f32
    %28 = vector.broadcast %cst_20 : f32 to vector<8x128xf32>
    %29 = arith.mulf %28, %5 : vector<8x128xf32>
    %30 = arith.addf %27, %29 : vector<8x128xf32>
    %cst_21 = arith.constant 1.280000e+02 : f32
    %31 = vector.broadcast %cst_21 : f32 to vector<8x128xf32>
    %32 = arith.addf %30, %31 : vector<8x128xf32>
    %33 = tpu.weird %32 : vector<8x128xf32> -> vector<8x128xi1>
    %cst_22 = arith.constant dense<true> : vector<8x128xi1>
    %34 = arith.xori %33, %cst_22 : vector<8x128xi1>
    %cst_23 = arith.constant 0.000000e+00 : f32
    %35 = vector.broadcast %cst_23 : f32 to vector<8x128xf32>
    %36 = arith.select %34, %32, %35 : vector<8x128xi1>, vector<8x128xf32>
    %c0_24 = arith.constant 0 : index
    %c1_25 = arith.constant 1 : index
    %c0_26 = arith.constant 0 : index
    %c0_27 = arith.constant 0 : index
    %37 = vector.load %arg2[%c0_24, %c1_25, %c0_26, %c0_27] : memref<1x3x8x128xf32, #tpu.memory_space<vmem>>, vector<1x1x8x128xf32>
    %38 = vector.shape_cast %37 : vector<1x1x8x128xf32> to vector<8x128xf32>
    %39 = vector.shape_cast %36 : vector<8x128xf32> to vector<1x1x8x128xf32>
    tpu.vector_store %arg2[%c0_24, %c1_25, %c0_26, %c0_27], %39 {strides = array<i32>} : memref<1x3x8x128xf32, #tpu.memory_space<vmem>>, vector<1x1x8x128xf32>,
    %cst_28 = arith.constant 5.000000e-01 : f32
    %40 = vector.broadcast %cst_28 : f32 to vector<8x128xf32>
    %41 = arith.mulf %40, %1 : vector<8x128xf32>
    %cst_29 = arith.constant -4.186880e-01 : f32
    %42 = vector.broadcast %cst_29 : f32 to vector<8x128xf32>
    %43 = arith.mulf %42, %3 : vector<8x128xf32>
    %44 = arith.addf %41, %43 : vector<8x128xf32>
    %cst_30 = arith.constant -8.131200e-02 : f32
    %45 = vector.broadcast %cst_30 : f32 to vector<8x128xf32>
    %46 = arith.mulf %45, %5 : vector<8x128xf32>
    %47 = arith.addf %44, %46 : vector<8x128xf32>
    %cst_31 = arith.constant 1.280000e+02 : f32
    %48 = vector.broadcast %cst_31 : f32 to vector<8x128xf32>
    %49 = arith.addf %47, %48 : vector<8x128xf32>
    %50 = tpu.weird %49 : vector<8x128xf32> -> vector<8x128xi1>
    %cst_32 = arith.constant dense<true> : vector<8x128xi1>
    %51 = arith.xori %50, %cst_32 : vector<8x128xi1>
    %cst_33 = arith.constant 0.000000e+00 : f32
    %52 = vector.broadcast %cst_33 : f32 to vector<8x128xf32>
    %53 = arith.select %51, %49, %52 : vector<8x128xi1>, vector<8x128xf32>
    %c0_34 = arith.constant 0 : index
    %c2_35 = arith.constant 2 : index
    %c0_36 = arith.constant 0 : index
    %c0_37 = arith.constant 0 : index
    %54 = vector.load %arg2[%c0_34, %c2_35, %c0_36, %c0_37] : memref<1x3x8x128xf32, #tpu.memory_space<vmem>>, vector<1x1x8x128xf32>
    %55 = vector.shape_cast %54 : vector<1x1x8x128xf32> to vector<8x128xf32>
    %56 = vector.shape_cast %53 : vector<8x128xf32> to vector<1x1x8x128xf32>
    tpu.vector_store %arg2[%c0_34, %c2_35, %c0_36, %c0_37], %56 {strides = array<i32>} : memref<1x3x8x128xf32, #tpu.memory_space<vmem>>, vector<1x1x8x128xf32>,
    return
  }
  func.func @transform_0(%arg0: i32) -> (i32, i32, i32, i32) {
    %c0_i32 = arith.constant 0 : i32
    %c0_i32_0 = arith.constant 0 : i32
    %c0_i32_1 = arith.constant 0 : i32
    %c0_i32_2 = arith.constant 0 : i32
    return %c0_i32, %c0_i32_0, %arg0, %c0_i32_1 : i32, i32, i32, i32
  }
  func.func @transform_1(%arg0: i32) -> (i32, i32, i32, i32) {
    %c0_i32 = arith.constant 0 : i32
    %c0_i32_0 = arith.constant 0 : i32
    %c0_i32_1 = arith.constant 0 : i32
    %c0_i32_2 = arith.constant 0 : i32
    return %c0_i32, %c0_i32_0, %arg0, %c0_i32_1 : i32, i32, i32, i32
  }
}

</mosaic_0001>

<bundles_post_ra>
// kernel: tpu_custom_call.1
= control target key start
LH: loop header
LB: loop body
LE: loop exit
PB: predicated region body
PF: predicated region fallthrough
CT: control target
= control target key end

     0   :  { %6 = vsyncpa [#allocation3], 0  ;;  %s587_s0 = inlined_call_operand.hbm [shape: f32[1,3,16,128], index: 0, kind: input, shape index: {}]   ;;  %s588_s1 = inlined_call_operand.hbm [shape: f32[1,3,16,128], index: 1, kind: output, shape index: {}]  }
   0x1   :  { %8 = vsyncpa [#allocation3 + $0x1], 0 }
   0x2   :  { %9 = vsyncpa [#allocation4], 0 }
   0x3   :  { %11 = vsyncpa [#allocation4 + $0x1], 0  ;;  %s437_s6 = smov 0   ;;  %s439_s7 = smov 0  }
   0x4   :  { %s441_s8 = smov 0   ;;  %s443_s9 = smov 0  }
   0x5 LB: > { %s458_s10 = sadd.s32 4294967295, %s416_s9   ;;  %s257_s11 = sadd.s32 4294967294, %s416_s9   ;;  %s416_s9 = sphi %s443_s9, %s603_s9   ;;  %s412_s8 = sphi %s441_s8, %s602_s8   ;;  %s408_s7 = sphi %s439_s7, %s601_s7   ;;  %s404_s6 = sphi %s437_s6, %s600_s6  }
   0x6   : > { %s462_s12 = sadd.s32 1, %s416_s9   ;;  %s24_s13 = sadd.s32 1, %s412_s8 }
   0x7   : > { %s21_s14 = ssub.s32 %s416_s9, %s462_s12  ;;  %p31_p0 = scmp.ne.s32.totalorder %s412_s8, %s408_s7 }
   0x8   : > { %p22_p1 = scmp.eq.s32.totalorder %s21_s14, 0  ;;  %p32_p2 = scmp.eq.s32.totalorder %s416_s9, 0 }
   0x9   : > { %p37_p3 = scmp.ne.s32.totalorder %s408_s7, %s404_s6  ;;  %p38_p4 = scmp.eq.s32.totalorder %s458_s10, 0 }
   0xa   : > { %s474_s15 = scalar_select %p22_p1, %s412_s8, %s24_s13  }
   0xb   : > { %p33_p5 = por %p32_p2, %p31_p0  ;;  %p476_p6 = por %p38_p4, %p37_p3 }
   0xc   : > { %p61_p7 = scmp.eq.s32.totalorder %s458_s10, 1  ;;  %p67_p8 = scmp.eq.s32.totalorder %s257_s11, 1 }
   0xd   : > { %s591_s16 = scalar_select %p476_p6, 1, 0 }
   0xe   : > { %p283_p10 = scmp.lt.s32.totalorder %s416_s9, 2  ;;  %p483_p11 = por %p61_p7, %p31_p0 }
   0xf   : > { %p487_p12 = por %p67_p8, %p37_p3  ;;  %s87_s19 = sand.u32 1, %s412_s8  }
  0x10   : > { %s592_s17 = scalar_select %p483_p11, 1, 0 }
  0x11   : > { %s593_s18 = scalar_select %p487_p12, 1, 0 }
  0x12   : > { %s260_s20 = sshll.u32 %s416_s9, 7  ;;  %s269_s21 = smul.u32 24, %s87_s19 }
  0x13   : > { %s496_s24 = scalar_lea.hbm %s587_s0, %s260_s20  ;;  %p498_p13 = pnand %p283_p10, %p33_p5 }
  0x14   : > { %s91_s26 = scalar_lea.vmem [#allocation2], %s269_s21  ;;  %s505_s28 = scalar_lea.sflag [#allocation3], %s87_s19 }
  0x15   : > { %s97_s27 = sshll.u32 %s91_s26, 4  ;;  %s324_s29 = scalar_lea.hbm %s496_s24, 384  ;;  %s502_s27 = int_to_ptr.vmem [resolvable:$true] %s97_s27 }
  0x16   : > { %p325_p1 = scmp.ne.s32.totalorder %s496_s24, %s324_s29  ;;  %p326_p2 = pneg %p498_p13 }
  0x17   : > { %s329_s3 = scalar_lea.hbm %s587_s0, 768  ;;  %p330_p5 = scmp.lt.s32.totalorder %s496_s24, %s587_s0 }
  0x18   : > { %p327_p3 = pnand %p326_p2, %p325_p1  ;;  %p331_p7 = scmp.lt.s32.totalorder %s329_s3, %s324_s29 }
  0x1a   : > { %p328_p4 = pneg %p327_p3  ;;  %p332_p8 = por %p331_p7, %p330_p5 }
  0x1c   : > { %p333_p10 = pnand %p332_p8, %p328_p4 }
  0x1e   : > { %336 = shalt.err (!%p333_p10)
}
  0x1f   : > { %s337_s11 = scalar_lea.vmem %s502_s27, 384  ;;  %s418_s13 = smov [#allocation2]  }
  0x20   : > { %p338_p9 = scmp.ne.s32.totalorder %s502_s27, %s337_s11  ;;  %s342_s14 = sshll.u32 %s418_s13, 4  ;;  %s343_s14 = int_to_ptr.vmem [resolvable:$false] %s342_s14 }
  0x21   : > { %s344_s19 = scalar_lea.vmem %s343_s14, 768  ;;  %p345_p3 = scmp.lt.s32.totalorder %s502_s27, %s343_s14 }
  0x22   : > { %p340_p0 = pnand %p338_p9, %p326_p2  ;;  %p346_p12 = scmp.lt.s32.totalorder %s344_s19, %s337_s11 }
  0x24   : > { %p341_p1 = pneg %p340_p0  ;;  %p347_p11 = por %p346_p12, %p345_p3 }
  0x26   : > { %p348_p6 = pnand %p347_p11, %p341_p1 }
  0x28   : > { %351 = shalt.err (!%p348_p6)
}
  0x29   : > { %s419_s20 = smov 256   ;;  %s420_s21 = smov 128  }
  0x2a   : > { %s421_s22 = smov 8   ;;  %p105_p9 = scmp.lt.s32.totalorder %s416_s9, 3 }
  0x2b   : > { %278 = dma.hbm_to_vmem [thread:$0]  (!%p498_p13), %s496_s24, 384, %s502_s27, %s505_s28, %s419_s20, %s420_s21, %s421_s22  }
  0x2c   : > { %p595_p0 = scmp.ge.s32.totalorder %s416_s9, 1 }
  0x2e   : > { %p106_p2 = pnand %p595_p0, %p105_p9 }
  0x2f   : > { %s530_s23 = sand.u32 (!%p106_p2), 1, %s408_s7   ;;  %p596_p6 = scmp.ne.s32.totalorder (!%p106_p2), %s591_s16, 0 }
  0x30   : > { %109 = sbr.rel (%p106_p2) target bundleno = 83 (0x53), region = 24  ;;  %s112_s29 = scalar_lea.sflag (!%p106_p2), [#allocation3], %s530_s23 }
  0x31   : > { %s270_s26 = smul.u32 (!%p106_p2), 24, %s530_s23 }
  0x33   : > { %s115_s30 = scalar_lea.vmem (!%p106_p2), [#allocation2], %s270_s26 }
  0x35   : > { %395 = dma.done.wait (%p596_p6), %s112_s29, 384  }
  0x36   : > { %397 = vsyncadd (%p596_p6), %s112_s29, 4294966912  ;;  %v134_v0 = vld [vmem:[%s115_s30] sm:$0xff]  ;;  %v262_v1 = vld [vmem:[%s115_s30 + $0x8] sm:$0xff]  ;;  %s133_s16 = scalar_lea.vmem [#allocation5], %s270_s26  ;;  %vm422_vm1 = vmmov 1   ;;  %s266_s25 = sshll.u32 %s458_s10, 7 }
  0x37   : > { %v263_v2 = vld [vmem:[%s115_s30 + $0x10] sm:$0xff]  ;;  %v139_v3 = vmul.f32 0.299, %v134_v0  ;;  %v140_v4 = vmul.f32 0.587, %v262_v1  ;;  %v160_v9 = vmul.f32 0.5, %v134_v0  ;;  %s544_s2 = scalar_lea.hbm %s588_s1, %s266_s25 }
  0x38   : > { %v142_v5 = vmul.f32 0.114, %v263_v2  ;;  %v149_v6 = vmul.f32 -0.168736, %v134_v0  ;;  %v150_v7 = vmul.f32 -0.331264, %v262_v1 }
  0x39   : > { %v152_v8 = vmul.f32 0.5, %v263_v2  ;;  %v141_v10 = vadd.f32 %v140_v4, %v139_v3  ;;  %v161_v11 = vmul.f32 -0.418688, %v262_v1  ;;  %v163_v12 = vmul.f32 -0.081312, %v263_v2  ;;  %s184_s24 = sshll.u32 %s133_s16, 4  ;;  %s539_s24 = int_to_ptr.vmem [resolvable:$true] %s184_s24 }
  0x3a   : > { %v151_v13 = vadd.f32 %v150_v7, %v149_v6  ;;  %s172_s10 = scalar_lea.sflag [#allocation4], %s530_s23  ;;  %s352_s3 = scalar_lea.vmem %s539_s24, 384 }
  0x3b   : > { %v143_v14 = vadd.f32 %v142_v5, %v141_v10  ;;  %v162_v15 = vadd.f32 %v161_v11, %v160_v9  ;;  %p353_p11 = scmp.ne.s32.totalorder %s539_s24, %s352_s3  ;;  %p597_p12 = scmp.ne.s32.totalorder %s592_s17, 0 }
  0x3c   : > { %v153_v16 = vadd.f32 %v152_v8, %v151_v13  ;;  %s423_s4 = smov [#allocation5]  }
  0x3d   : > { %vm145_vm0 = vweird.f32 %v143_v14  ;;  %v164_v17 = vadd.f32 %v163_v12, %v162_v15  ;;  %p354_p13 = pnand %p353_p11, %p597_p12  ;;  %s356_s5 = sshll.u32 %s423_s4, 4  ;;  %s357_s5 = int_to_ptr.vmem [resolvable:$false] %s356_s5 }
  0x3e   : > { %vm146_vm2 = vmxor %vm145_vm0, %vm422_vm1  ;;  %v154_v18 = vadd.f32 128.0, %v153_v16  ;;  %s358_s11 = scalar_lea.vmem %s357_s5, 768  ;;  %p359_p5 = scmp.lt.s32.totalorder %s539_s24, %s357_s5 }
  0x3f   : > { %v147_v19 = vsel %vm146_vm2, %v143_v14, 0.0  ;;  %v165_v20 = vadd.f32 128.0, %v164_v17  ;;  %p355_p4 = pneg %p354_p13  ;;  %p360_p7 = scmp.lt.s32.totalorder %s358_s11, %s352_s3 }
  0x40   : > { %148 = vst [vmem:[%s133_s16] sm:$0xff] %v147_v19  ;;  %vm155_vm3 = vweird.f32 %v154_v18 }
  0x41   : > { %vm156_vm4 = vmxor %vm155_vm3, %vm422_vm1  ;;  %vm166_vm5 = vweird.f32 %v165_v20  ;;  %p361_p8 = por %p360_p7, %p359_p5 }
  0x42   : > { %v157_v21 = vsel %vm156_vm4, %v154_v18, 0.0  ;;  %vm167_vm6 = vmxor %vm166_vm5, %vm422_vm1 }
  0x43   : > { %264 = vst [vmem:[%s133_s16 + $0x8] sm:$0xff] %v157_v21  ;;  %v168_v22 = vsel %vm167_vm6, %v165_v20, 0.0  ;;  %p362_p10 = pnand %p361_p8, %p355_p4 }
  0x44   : > { %265 = vst [vmem:[%s133_s16 + $0x10] sm:$0xff] %v168_v22 }
  0x45   : > { %365 = shalt.err (!%p362_p10)
}
  0x46   : > { %s366_s13 = scalar_lea.hbm %s544_s2, 384  ;;  %s370_s20 = scalar_lea.hbm %s588_s1, 768 }
  0x47   : > { %p367_p1 = scmp.ne.s32.totalorder %s544_s2, %s366_s13  ;;  %p371_p0 = scmp.lt.s32.totalorder %s544_s2, %s588_s1 }
  0x48   : > { %p372_p2 = scmp.lt.s32.totalorder %s370_s20, %s366_s13 }
  0x49   : > { %p368_p3 = pnand %p367_p1, %p597_p12 }
  0x4a   : > { %p373_p6 = por %p372_p2, %p371_p0 }
  0x4b   : > { %p369_p9 = pneg %p368_p3 }
  0x4d   : > { %p374_p11 = pnand %p373_p6, %p369_p9 }
  0x4f   : > { %377 = shalt.err (!%p374_p11)
}
  0x50   : > { %s424_s26 = smov 128   ;;  %s425_s29 = smov 256  }
  0x51   : > { %s426_s30 = smov 8  }
  0x52   : > { %273 = dma.vmem_to_hbm [thread:$0]  (%p597_p12), %s539_s24, 384, %s544_s2, %s172_s10, %s424_s26, %s425_s29, %s426_s30  }
  0x53 PF: > { %s199_s16 = sand.u32 1, %s404_s6   ;;  %p598_p13 = scmp.ne.s32.totalorder %s593_s18, 0 }
  0x54   : > { %p599_p4 = scmp.ge.s32.totalorder %s416_s9, 2  ;;  %s200_s25 = scalar_lea.sflag [#allocation4], %s199_s16 }
  0x56   : > { %p280_p5 = pnand %p599_p4, %p598_p13 }
  0x58   : > { %p281_p7 = pneg %p280_p5 }
  0x5a   : > { %399 = dma.done.wait (%p281_p7), %s200_s25, 384  }
  0x5b   : > { %401 = vsyncadd (%p281_p7), %s200_s25, 4294966912  ;;  %p14_p8 = scmp.ge.s32.totalorder %s462_s12, 4   ;;  %s600_s6 = smov %s408_s7 }
  0x5c   : > { %s601_s7 = smov %s412_s8  ;;  %s602_s8 = smov %s474_s15 }
  0x5d   : > { %s603_s9 = smov %s462_s12  ;;  %16 = sbr.rel (!%p14_p8) target bundleno = 5 (0x5), region = 73 }
  0x62   :  { %205 = vsyncpa [#allocation3], 1 }
  0x63   :  { %207 = vsyncpa [#allocation3 + $0x1], 1 }
  0x64   :  { %208 = vsyncpa [#allocation4], 1 }
  0x65   :  { %210 = vsyncpa [#allocation4 + $0x1], 1 }

</bundles_post_ra>
